<compile_context>
chip_gen: v7x
topology: tpu7x:2x2x1
jax: 0.10.0
libtpu: 0.0.40
codegen_flags: <defaults>
</compile_context>

<pallas_src>
import functools

import numpy as np
import jax
import jax.numpy as jnp
from jax import lax
from jax.experimental import pallas as pl
from jax.experimental.pallas import tpu as pltpu


# ---------------------------------------------------------------------------
# Helpers
# ---------------------------------------------------------------------------
def _round_up(x, m):
    return ((x + m - 1) // m) * m


def _pick_tile(n, pref):
    """Tile size + padded extent for a dimension of logical size n."""
    if n >= pref:
        return pref, _round_up(n, pref)
    t = _round_up(max(n, 1), 8)
    return t, t


def _l2norm(x):
    # F.normalize(x, dim=-1): x / max(||x||_2, 1e-12)  (rsqrt form -> EUP slot)
    ss = jnp.sum(x * x, axis=-1, keepdims=True)
    return x * lax.rsqrt(jnp.maximum(ss, jnp.float32(1e-24)))


# ---------------------------------------------------------------------------
# Pallas kernels
# ---------------------------------------------------------------------------
def _up_kernel(ue_ref, pe_ref, logs_ref, *, inv_t, batch, tb):
    """Per batch tile: masked per-row log(exp(ip/T) + exp(ip^2/T))."""
    ue = _l2norm(ue_ref[...])                                        # [TB, D]
    pe = _l2norm(pe_ref[...])                                        # [TB, D]
    ip = jnp.sum(ue * pe, axis=-1, keepdims=True)                    # [TB, 1]
    ipt = ip * inv_t
    logs = jnp.log(jnp.exp(ipt) + jnp.exp(ipt * ip))                 # ip^2/T == (ip/T)*ip
    # Mask padded batch rows (zero embeddings would otherwise give log(2)).
    rows = pl.program_id(0) * tb + lax.broadcasted_iota(jnp.int32, logs.shape, 0)
    logs_ref[...] = jnp.where(rows < batch, logs, 0.0)


def _down_kernel(uu_ref, ii_ref, ic_ref, part_ref, *, inv_t, exp_bf16):
    """Per (Nu-tile, Ni-tile): part[i] += sum_j count_i[j] * score[i, j].

    uu/ii arrive already L2-normalized (hoisted to XLA).  The weighted lane
    reduction is an MXU matvec (score @ ic) so the VPU/XLU stay free.
    """
    @pl.when(pl.program_id(1) == 0)
    def _init():
        part_ref[...] = jnp.zeros_like(part_ref)

    # A @ B^T by contracting last dims directly (MXU-native, no transpose).
    sim = lax.dot_general(uu_ref[...], ii_ref[...],
                          dimension_numbers=(((1,), (1,)), ((), ())),
                          preferred_element_type=jnp.float32)        # [TM, TN]
    simt = sim * inv_t                                               # sim/T
    sq = simt * sim                                                  # sim^2/T
    if exp_bf16:
        score = jnp.exp(simt.astype(jnp.bfloat16)) + jnp.exp(sq.astype(jnp.bfloat16))
        ic = ic_ref[...].astype(jnp.bfloat16)
    else:
        score = jnp.exp(simt) + jnp.exp(sq)
        ic = ic_ref[...].astype(jnp.float32)
    # row[i] = sum_j score[i,j] * ic[j]   -- MXU matvec, f32 accumulate.
    row = lax.dot_general(score, ic,
                          dimension_numbers=(((1,), (0,)), ((), ())),
                          preferred_element_type=jnp.float32)        # [TM, 1]
    part_ref[...] += row


# ---------------------------------------------------------------------------
# Wrapper
# ---------------------------------------------------------------------------
@functools.partial(jax.jit,
                   static_argnames=("temperature", "sim_dtype", "exp_dtype"))
def sccf_forward(user_weight, item_weight, user, positive, negative,
                 temperature, sim_dtype=jnp.float32, exp_dtype=jnp.float32):
    """Reproduces SCCF.forward for encoder == 'MF'.  Returns [-up, down]."""
    del negative                                    # unused, as in the original
    # TODO(synk): encoder=='GCN' aggregate() (sparse Graph @ embeddings) and
    # get_rating_for_test() are not implemented; only the 'MF' forward path is.

    B = int(user.shape[0])
    D = int(user_weight.shape[1])
    Dp = _round_up(D, 128)                          # lane-align embedding dim
    inv_t = float(1.0 / temperature)
    exp_bf16 = jnp.dtype(exp_dtype) == jnp.dtype(jnp.bfloat16)

    uw = jnp.pad(user_weight.astype(jnp.float32), ((0, 0), (0, Dp - D)))
    iw = jnp.pad(item_weight.astype(jnp.float32), ((0, 0), (0, Dp - D)))
    user = user.astype(jnp.int32)
    positive = positive.astype(jnp.int32)

    # ------------------------------------------------------------------ up --
    TB, Bp = _pick_tile(B, 1024)
    n_b = Bp // TB
    pad_b = lambda x: jnp.pad(x, ((0, Bp - x.shape[0]), (0, 0)))
    ue = pad_b(uw[user])                            # [Bp, Dp]
    pe = pad_b(iw[positive])                        # [Bp, Dp]

    up_vmem = int(min(max(2 * (2 * TB * Dp * 4 + TB * 128 * 4)
                          + 6 * TB * Dp * 4 + (8 << 20), 16 << 20), 56 << 20))

    log_rows = pl.pallas_call(
        functools.partial(_up_kernel, inv_t=inv_t, batch=B, tb=TB),
        grid=(n_b,),
        out_shape=jax.ShapeDtypeStruct((Bp, 1), jnp.float32),
        in_specs=[pl.BlockSpec((TB, Dp), lambda b: (b, 0)),
                  pl.BlockSpec((TB, Dp), lambda b: (b, 0))],
        out_specs=pl.BlockSpec((TB, 1), lambda b: (b, 0)),
        compiler_params=pltpu.CompilerParams(
            dimension_semantics=("parallel",),      # v7x: 2 TCs shard the grid
            vmem_limit_bytes=up_vmem),
        cost_estimate=pl.CostEstimate(
            flops=8 * Bp * Dp, transcendentals=5 * Bp,
            bytes_accessed=8 * Bp * Dp + 4 * Bp),
    )(ue, pe)
    up = jnp.sum(log_rows) * jnp.float32(1.0 / B)

    # ---------------------------------------------------------------- down --
    # unique + counts with static padded sizes (<= B uniques): padded entries
    # get sentinel -1 and count 0, contributing exactly 0.  O(B log B).
    u_vals, u_counts = jnp.unique(user, size=B, fill_value=-1, return_counts=True)
    i_vals, i_counts = jnp.unique(positive, size=B, fill_value=-1, return_counts=True)
    u_counts = u_counts.astype(jnp.float32)
    i_counts = i_counts.astype(jnp.float32)
    nu_true = jnp.sum(u_counts > 0).astype(jnp.float32)
    ni_true = jnp.sum(i_counts > 0).astype(jnp.float32)

    uu = jnp.where((u_vals >= 0)[:, None], uw[jnp.maximum(u_vals, 0)], 0.0)
    ii = jnp.where((i_vals >= 0)[:, None], iw[jnp.maximum(i_vals, 0)], 0.0)
    # Hoisted L2 normalization: done exactly once here instead of per tile
    # inside the kernel.  Stored in sim_dtype (bf16 path halves HBM traffic).
    uu = _l2norm(uu).astype(sim_dtype)
    ii = _l2norm(ii).astype(sim_dtype)

    TM, Nu_p = _pick_tile(B, 1024)                  # unique users  <= B
    TN, Ni_p = _pick_tile(B, 1024)                  # unique items  <= B
    uu = jnp.pad(uu, ((0, Nu_p - B), (0, 0)))       # [Nu_p, Dp]
    ii = jnp.pad(ii, ((0, Ni_p - B), (0, 0)))       # [Ni_p, Dp]
    ic = jnp.pad(i_counts[:, None], ((0, Ni_p - B), (0, 0)))   # [Ni_p, 1]
    uc = jnp.pad(u_counts, ((0, Nu_p - B),))                   # [Nu_p]
    n_m, n_n = Nu_p // TM, Ni_p // TN

    isz = jnp.dtype(sim_dtype).itemsize
    # double-buffered blocks (lane-padded 1-wide blocks count as 128 lanes)
    # + generous allowance for the [TM,TN] f32 sim/score temporaries.
    down_vmem = int(min(max(2 * ((TM + TN) * Dp * isz + (TM + TN) * 128 * 4)
                            + 10 * TM * TN * 4 + (8 << 20), 16 << 20), 56 << 20))

    partials = pl.pallas_call(
        functools.partial(_down_kernel, inv_t=inv_t, exp_bf16=exp_bf16),
        grid=(n_m, n_n),
        out_shape=jax.ShapeDtypeStruct((Nu_p, 1), jnp.float32),
        in_specs=[pl.BlockSpec((TM, Dp), lambda m, n: (m, 0)),
                  pl.BlockSpec((TN, Dp), lambda m, n: (n, 0)),
                  pl.BlockSpec((TN, 1), lambda m, n: (n, 0))],
        out_specs=pl.BlockSpec((TM, 1), lambda m, n: (m, 0)),
        compiler_params=pltpu.CompilerParams(
            dimension_semantics=("parallel", "arbitrary"),
            vmem_limit_bytes=down_vmem),
        cost_estimate=pl.CostEstimate(
            flops=2 * Nu_p * Ni_p * (Dp + 1) + 4 * Nu_p * Ni_p,
            transcendentals=2 * Nu_p * Ni_p,
            bytes_accessed=(Nu_p * Dp + n_m * Ni_p * Dp) * isz
                           + 4 * (Ni_p + 2 * Nu_p)),
    )(uu, ii, ic)

    # User-count weight + global mean applied in XLA (uc never enters the kernel).
    down = jnp.log(jnp.sum(uc * partials[:, 0]) / (nu_true * ni_true))
    return [-up, down]


# ---------------------------------------------------------------------------
# Pure-numpy (float64) reference for correctness checking
# ---------------------------------------------------------------------------
def sccf_forward_ref(user_weight, item_weight, user, positive, temperature):
    uw = np.asarray(user_weight, np.float64)
    iw = np.asarray(item_weight, np.float64)
    user = np.asarray(user)
    positive = np.asarray(positive)

    def l2n(x):
        n = np.linalg.norm(x, axis=-1, keepdims=True)
        return x / np.maximum(n, 1e-12)

    ue = l2n(uw[user]); pe = l2n(iw[positive])
    ip = np.sum(ue * pe, axis=1)
    up = np.mean(np.log(np.exp(ip / temperature) + np.exp(ip ** 2 / temperature)))

    u_idx, u_counts = np.unique(user, return_counts=True)
    i_idx, i_counts = np.unique(positive, return_counts=True)
    uu = l2n(uw[u_idx]); ii = l2n(iw[i_idx])
    sim = uu @ ii.T
    score = np.exp(sim / temperature) + np.exp(sim ** 2 / temperature)
    w = u_counts[:, None].astype(np.float64) @ i_counts[None, :].astype(np.float64)
    down = np.log(np.mean(score * w))
    return [-up, down]


# ---------------------------------------------------------------------------
# Deterministic parameter init (xavier_uniform, gain=1) + demo run
# ---------------------------------------------------------------------------
def xavier_uniform(key, shape):
    bound = float(np.sqrt(6.0 / (shape[0] + shape[1])))
    return jax.random.uniform(key, shape, jnp.float32, -bound, bound)


if __name__ == "__main__":
    # Synthetic config: num_users=16, num_items=16, embedding_size=32,
    # temperature=0.2, encoder='MF', batch=8.
    num_users, num_items, emb_dim = 16, 16, 32
    batch = 8
    temperature = 0.2

    key = jax.random.PRNGKey(0)
    k_u, k_i, k_user, k_pos, k_neg = jax.random.split(key, 5)

    user_weight = xavier_uniform(k_u, (num_users, emb_dim))
    item_weight = xavier_uniform(k_i, (num_items, emb_dim))

    user = jax.random.randint(k_user, (batch,), 0, num_users, jnp.int32)
    positive = jax.random.randint(k_pos, (batch,), 0, num_items, jnp.int32)
    negative = jax.random.randint(k_neg, (batch,), 0, num_items, jnp.int32)

    # f32 path (exact).
    out_f32 = sccf_forward(user_weight, item_weight, user, positive, negative,
                           temperature=temperature)
    out_f32 = [np.asarray(jax.block_until_ready(x)) for x in out_f32]

    # bf16 MXU path (fast path on every gen; pass exp_dtype=jnp.bfloat16 on
    # v6e/v7x to also run the exp scoring on the bf16 EUP).
    out_bf16 = sccf_forward(user_weight, item_weight, user, positive, negative,
                            temperature=temperature, sim_dtype=jnp.bfloat16)
    out_bf16 = [np.asarray(jax.block_until_ready(x)) for x in out_bf16]

    ref = sccf_forward_ref(np.asarray(user_weight), np.asarray(item_weight),
                           np.asarray(user), np.asarray(positive), temperature)

    ok_f32 = all(np.allclose(a, b, rtol=5e-3, atol=5e-3)
                 for a, b in zip(out_f32, ref))
    ok_bf16 = all(np.allclose(a, b, rtol=5e-2, atol=5e-2)
                  for a, b in zip(out_bf16, ref))

    if ok_f32 and ok_bf16:
        print("KERNEL_OK")
    else:
        raise SystemExit(f"mismatch: f32={out_f32} bf16={out_bf16} ref={ref}")
</pallas_src>

<mosaic_0001>
module attributes {stable_mosaic.version = 11 : i64} {
  func.func @_down_kernel(%arg0: i32, %arg1: i32, %arg2: memref<8x128xf32, #tpu.memory_space<vmem>>, %arg3: memref<8x128xf32, #tpu.memory_space<vmem>>, %arg4: memref<8x1xf32, #tpu.memory_space<vmem>>, %arg5: memref<8x1xf32, #tpu.memory_space<vmem>>) attributes {dimension_semantics = [#tpu.dimension_semantics<parallel>, #tpu.dimension_semantics<arbitrary>], iteration_bounds = array<i64: 1, 1>, scalar_prefetch = 0 : i64, scratch_operands = 0 : i64, tpu.core_type = #tpu.core_type<tc>, window_params = [{transform_indices = @transform_0, window_bounds = array<i64: 8, 128>}, {transform_indices = @transform_1, window_bounds = array<i64: 8, 128>}, {transform_indices = @transform_2, window_bounds = array<i64: 8, 1>}, {transform_indices = @transform_3, window_bounds = array<i64: 8, 1>}]} {
    %c0_i32 = arith.constant 0 : i32
    %0 = arith.cmpi eq, %arg1, %c0_i32 : i32
    %1 = arith.extui %0 : i1 to i32
    %c0_i32_0 = arith.constant 0 : i32
    %2 = arith.cmpi ne, %1, %c0_i32_0 : i32
    scf.if %2 {
      %cst_12 = arith.constant 0.000000e+00 : f32
      %17 = vector.broadcast %cst_12 : f32 to vector<8x1xf32>
      %c0_13 = arith.constant 0 : index
      %c0_14 = arith.constant 0 : index
      %18 = vector.load %arg5[%c0_13, %c0_14] : memref<8x1xf32, #tpu.memory_space<vmem>>, vector<8x1xf32>
      tpu.vector_store %arg5[%c0_13, %c0_14], %17 {strides = array<i32>} : memref<8x1xf32, #tpu.memory_space<vmem>>, vector<8x1xf32>,
    } else {
    }
    %c0 = arith.constant 0 : index
    %c0_1 = arith.constant 0 : index
    %3 = vector.load %arg2[%c0, %c0_1] : memref<8x128xf32, #tpu.memory_space<vmem>>, vector<8x128xf32>
    %c0_2 = arith.constant 0 : index
    %c0_3 = arith.constant 0 : index
    %4 = vector.load %arg3[%c0_2, %c0_3] : memref<8x128xf32, #tpu.memory_space<vmem>>, vector<8x128xf32>
    %cst = arith.constant dense<0.000000e+00> : vector<8x8xf32>
    %5 = tpu.matmul %3, %4, %cst {dimension_numbers = #tpu.dot_dimension_numbers<[1], [1], [0], [0], [0, 0, 1, 0], [], []>} : vector<8x128xf32>, vector<8x128xf32>, vector<8x8xf32> -> vector<8x8xf32>
    %cst_4 = arith.constant 5.000000e+00 : f32
    %6 = vector.broadcast %cst_4 : f32 to vector<8x8xf32>
    %7 = arith.mulf %5, %6 : vector<8x8xf32>
    %8 = arith.mulf %7, %5 : vector<8x8xf32>
    %9 = math.exp %7 : vector<8x8xf32>
    %10 = math.exp %8 : vector<8x8xf32>
    %11 = arith.addf %9, %10 : vector<8x8xf32>
    %c0_5 = arith.constant 0 : index
    %c0_6 = arith.constant 0 : index
    %12 = vector.load %arg4[%c0_5, %c0_6] : memref<8x1xf32, #tpu.memory_space<vmem>>, vector<8x1xf32>
    %cst_7 = arith.constant dense<0.000000e+00> : vector<8x1xf32>
    %13 = tpu.matmul %11, %12, %cst_7 {dimension_numbers = #tpu.dot_dimension_numbers<[1], [0], [0], [1], [0, 0, 1, 1], [], []>} : vector<8x8xf32>, vector<8x1xf32>, vector<8x1xf32> -> vector<8x1xf32>
    %c0_8 = arith.constant 0 : index
    %c0_9 = arith.constant 0 : index
    %14 = vector.load %arg5[%c0_8, %c0_9] : memref<8x1xf32, #tpu.memory_space<vmem>>, vector<8x1xf32>
    %15 = arith.addf %14, %13 : vector<8x1xf32>
    %c0_10 = arith.constant 0 : index
    %c0_11 = arith.constant 0 : index
    %16 = vector.load %arg5[%c0_10, %c0_11] : memref<8x1xf32, #tpu.memory_space<vmem>>, vector<8x1xf32>
    tpu.vector_store %arg5[%c0_10, %c0_11], %15 {strides = array<i32>} : memref<8x1xf32, #tpu.memory_space<vmem>>, vector<8x1xf32>,
    return
  }
  func.func @transform_0(%arg0: i32, %arg1: i32) -> (i32, i32) {
    %c0_i32 = arith.constant 0 : i32
    %c0_i32_0 = arith.constant 0 : i32
    return %arg0, %c0_i32 : i32, i32
  }
  func.func @transform_1(%arg0: i32, %arg1: i32) -> (i32, i32) {
    %c0_i32 = arith.constant 0 : i32
    %c0_i32_0 = arith.constant 0 : i32
    return %arg1, %c0_i32 : i32, i32
  }
  func.func @transform_2(%arg0: i32, %arg1: i32) -> (i32, i32) {
    %c0_i32 = arith.constant 0 : i32
    %c0_i32_0 = arith.constant 0 : i32
    return %arg1, %c0_i32 : i32, i32
  }
  func.func @transform_3(%arg0: i32, %arg1: i32) -> (i32, i32) {
    %c0_i32 = arith.constant 0 : i32
    %c0_i32_0 = arith.constant 0 : i32
    return %arg0, %c0_i32 : i32, i32
  }
}

module attributes {stable_mosaic.version = 11 : i64} {
  func.func @_up_kernel(%arg0: i32, %arg1: memref<8x128xf32, #tpu.memory_space<vmem>>, %arg2: memref<8x128xf32, #tpu.memory_space<vmem>>, %arg3: memref<8x1xf32, #tpu.memory_space<vmem>>) attributes {dimension_semantics = [#tpu.dimension_semantics<parallel>], iteration_bounds = array<i64: 1>, scalar_prefetch = 0 : i64, scratch_operands = 0 : i64, tpu.core_type = #tpu.core_type<tc>, window_params = [{transform_indices = @transform_0, window_bounds = array<i64: 8, 128>}, {transform_indices = @transform_1, window_bounds = array<i64: 8, 128>}, {transform_indices = @transform_2, window_bounds = array<i64: 8, 1>}]} {
    %c0 = arith.constant 0 : index
    %c0_0 = arith.constant 0 : index
    %0 = vector.load %arg1[%c0, %c0_0] : memref<8x128xf32, #tpu.memory_space<vmem>>, vector<8x128xf32>
    %1 = arith.mulf %0, %0 : vector<8x128xf32>
    %cst = arith.constant dense<0.000000e+00> : vector<8xf32>
    %2 = vector.multi_reduction <add>, %1, %cst [1] : vector<8x128xf32> to vector<8xf32>
    %3 = vector.shape_cast %2 : vector<8xf32> to vector<8x1xf32>
    %cst_1 = arith.constant 1.000000e-24 : f32
    %4 = vector.broadcast %cst_1 : f32 to vector<8x1xf32>
    %5 = arith.maximumf %3, %4 : vector<8x1xf32>
    %6 = math.rsqrt %5 : vector<8x1xf32>
    %7 = vector.broadcast %6 : vector<8x1xf32> to vector<8x128xf32>
    %8 = arith.mulf %0, %7 : vector<8x128xf32>
    %c0_2 = arith.constant 0 : index
    %c0_3 = arith.constant 0 : index
    %9 = vector.load %arg2[%c0_2, %c0_3] : memref<8x128xf32, #tpu.memory_space<vmem>>, vector<8x128xf32>
    %10 = arith.mulf %9, %9 : vector<8x128xf32>
    %cst_4 = arith.constant dense<0.000000e+00> : vector<8xf32>
    %11 = vector.multi_reduction <add>, %10, %cst_4 [1] : vector<8x128xf32> to vector<8xf32>
    %12 = vector.shape_cast %11 : vector<8xf32> to vector<8x1xf32>
    %cst_5 = arith.constant 1.000000e-24 : f32
    %13 = vector.broadcast %cst_5 : f32 to vector<8x1xf32>
    %14 = arith.maximumf %12, %13 : vector<8x1xf32>
    %15 = math.rsqrt %14 : vector<8x1xf32>
    %16 = vector.broadcast %15 : vector<8x1xf32> to vector<8x128xf32>
    %17 = arith.mulf %9, %16 : vector<8x128xf32>
    %18 = arith.mulf %8, %17 : vector<8x128xf32>
    %cst_6 = arith.constant dense<0.000000e+00> : vector<8xf32>
    %19 = vector.multi_reduction <add>, %18, %cst_6 [1] : vector<8x128xf32> to vector<8xf32>
    %20 = vector.shape_cast %19 : vector<8xf32> to vector<8x1xf32>
    %cst_7 = arith.constant 5.000000e+00 : f32
    %21 = vector.broadcast %cst_7 : f32 to vector<8x1xf32>
    %22 = arith.mulf %20, %21 : vector<8x1xf32>
    %23 = math.exp %22 : vector<8x1xf32>
    %24 = arith.mulf %22, %20 : vector<8x1xf32>
    %25 = math.exp %24 : vector<8x1xf32>
    %26 = arith.addf %23, %25 : vector<8x1xf32>
    %27 = math.log %26 : vector<8x1xf32>
    %c8_i32 = arith.constant 8 : i32
    %28 = arith.muli %arg0, %c8_i32 : i32
    %29 = tpu.iota {dimensions = array<i32: 0>} : vector<8x1xi32>
    %30 = vector.broadcast %28 : i32 to vector<8x1xi32>
    %31 = arith.addi %30, %29 : vector<8x1xi32>
    %c8_i32_8 = arith.constant 8 : i32
    %32 = vector.broadcast %c8_i32_8 : i32 to vector<8x1xi32>
    %33 = arith.cmpi slt, %31, %32 : vector<8x1xi32>
    %cst_9 = arith.constant 0.000000e+00 : f32
    %34 = vector.broadcast %cst_9 : f32 to vector<8x1xf32>
    %35 = arith.select %33, %27, %34 : vector<8x1xi1>, vector<8x1xf32>
    %c0_10 = arith.constant 0 : index
    %c0_11 = arith.constant 0 : index
    %36 = vector.load %arg3[%c0_10, %c0_11] : memref<8x1xf32, #tpu.memory_space<vmem>>, vector<8x1xf32>
    tpu.vector_store %arg3[%c0_10, %c0_11], %35 {strides = array<i32>} : memref<8x1xf32, #tpu.memory_space<vmem>>, vector<8x1xf32>,
    return
  }
  func.func @transform_0(%arg0: i32) -> (i32, i32) {
    %c0_i32 = arith.constant 0 : i32
    %c0_i32_0 = arith.constant 0 : i32
    return %arg0, %c0_i32 : i32, i32
  }
  func.func @transform_1(%arg0: i32) -> (i32, i32) {
    %c0_i32 = arith.constant 0 : i32
    %c0_i32_0 = arith.constant 0 : i32
    return %arg0, %c0_i32 : i32, i32
  }
  func.func @transform_2(%arg0: i32) -> (i32, i32) {
    %c0_i32 = arith.constant 0 : i32
    %c0_i32_0 = arith.constant 0 : i32
    return %arg0, %c0_i32 : i32, i32
  }
}

</mosaic_0001>

<bundles_post_ra>
// kernel: sccf_forward.2
= control target key start
LH: loop header
LB: loop body
LE: loop exit
PB: predicated region body
PF: predicated region fallthrough
CT: control target
= control target key end

     0   :  { %vm44_vm0 = vcmask 7168   ;;  %s84_s0 = inlined_call_operand.vmem [shape: f32[8,128], index: 0, kind: input, shape index: {}]   ;;  %s85_s1 = inlined_call_operand.vmem [shape: f32[8,128], index: 1, kind: input, shape index: {}]   ;;  %s86_s2 = inlined_call_operand.vmem [shape: f32[8,1], index: 2, kind: output, shape index: {}]  }
   0x1   :  { %v11_v0 = vld [vmem:[%s84_s0] sm:$0xff] }
   0x2   :  { %v18_v1 = vld [vmem:[%s85_s1] sm:$0xff]  ;;  %v12_v2 = vmul.f32 %v11_v0, %v11_v0 }
   0x3   :  { %v19_v3 = vmul.f32 %v18_v1, %v18_v1 }
   0x4   :  { %13 = vadd.xlane.f32.xlu0 %v12_v2 }
   0x8   :  { %20 = vadd.xlane.f32.xlu0 %v19_v3 }
  0x91   :  { %v14_v4 = vpop.xlane.xlu0 %13 }
  0x92   :  { %v15_v5 = vmax.f32 %v14_v4, 1e-24 }
  0x94   :  { %50 = vrsqrt.f32 %v15_v5 }
  0x95   :  { %v21_v6 = vpop.xlane.xlu0 %20 }
  0x96   :  { %v22_v7 = vmax.f32 %v21_v6, 1e-24 }
  0x98   :  { %52 = vrsqrt.f32 %v22_v7 }
  0x9e   :  { %v51_v8 = vpop.eup %50 }
  0x9f   :  { %v17_v10 = vmul.f32 %v51_v8, %v11_v0 }
  0xa2   :  { %v53_v9 = vpop.eup %52 }
  0xa3   :  { %v24_v11 = vmul.f32 %v53_v9, %v18_v1 }
  0xa5   :  { %v25_v12 = vmul.f32 %v24_v11, %v17_v10 }
  0xa7   :  { %26 = vadd.xlane.f32.xlu1 %v25_v12 }
 0x134   :  { %v27_v13 = vpop.xlane.xlu1 %26 }
 0x135   :  { %v28_v14 = vmul.f32 5.0, %v27_v13 }
 0x137   :  { %v29_v15 = vmul.f32 1.442695, %v28_v14  ;;  %v31_v16 = vmul.f32 %v28_v14, %v27_v13 }
 0x139   :  { %v32_v17 = vmul.f32 1.442695, %v31_v16  ;;  %54 = vpow2.f32 %v29_v15 }
 0x13b   :  { %56 = vpow2.f32 %v32_v17 }
 0x143   :  { %v55_v18 = vpop.eup %54 }
 0x145   :  { %v57_v19 = vpop.eup %56 }
 0x146   :  { %v34_v20 = vadd.f32 %v57_v19, %v55_v18 }
 0x148   :  { %58 = vlog2.f32 %v34_v20 }
 0x152   :  { %v59_v21 = vpop.eup %58 }
 0x153   :  { %v36_v22 = vmul.f32 0.6931472, %v59_v21 }
 0x155   :  { %45 = vst.msk [vmem:[%s86_s2] sm:$0xff] %vm44_vm0, %v36_v22 }

// kernel: sccf_forward.3
= control target key start
LH: loop header
LB: loop body
LE: loop exit
PB: predicated region body
PF: predicated region fallthrough
CT: control target
= control target key end

     0   :  { %v203_v0 = vmov 0.0   ;;  %vm204_vm0 = vmmov 0   ;;  %vm18_vm1 = vcmask 7168   ;;  %vm100_vm2 = vcmask 64512   ;;  %s245_s1 = inlined_call_operand.vmem [shape: f32[8,128], index: 1, kind: input, shape index: {}]   ;;  %s246_s0 = inlined_call_operand.vmem [shape: f32[8,128], index: 0, kind: input, shape index: {}]   ;;  %s247_s2 = inlined_call_operand.vmem [shape: f32[8,1], index: 2, kind: input, shape index: {}]   ;;  %s248_s3 = inlined_call_operand.vmem [shape: f32[8,1], index: 3, kind: output, shape index: {}]  }
   0x1   :  { %187 = vmatprep.subr.mxu0 %v203_v0  ;;  %v21_v1 = vld [vmem:[%s245_s1] sm:$0xff]  ;;  %189 = vmatprep.mubr.msk.f32.mxu0 %vm204_vm0, %v203_v0  ;;  %19 = vst.msk [vmem:[%s248_s3] sm:$0xff] %vm18_vm1, %v203_v0 }
   0x2   :  { %188 = vmatpush3.xpose.msra.mxu0 %v21_v1  ;;  %v20_v2 = vld [vmem:[%s246_s0] sm:$0xff]  ;;  %192 = vmatprep.subr.mxu1 %v203_v0 }
   0x3   :  { %194 = vmatprep.mubr.msk.f32.mxu1 %vm204_vm0, %v203_v0  ;;  %v99_v3 = vld [vmem:[%s247_s2] sm:$0xff] }
   0x4   :  { %193 = vmatpush3.msra.mxu1 %v99_v3 }
   0x5   :  { %190 = vmatmul.mubr.f32.vlgmr.msra.gmra.mrb[0].mxu0 %v20_v2 }
   0x8   :  { %v174_v13 = vld [vmem:[%s248_s3] sm:$0xff] }
  0xd8   :  { %v88_v4 = vpop.f32.mrb[0].mxu0 }
  0xd9   :  { %v92_v5 = vmul.f32 5.0, %v88_v4  ;;  %v191_v6 = vpop.f32.mrb[1].mxu0 }
  0xdb   :  { %v93_v7 = vmul.f32 %v92_v5, %v88_v4  ;;  %v94_v8 = vmul.f32 1.442695, %v92_v5 }
  0xdd   :  { %v96_v9 = vmul.f32 1.442695, %v93_v7  ;;  %199 = vpow2.f32 %v94_v8 }
  0xdf   :  { %201 = vpow2.f32 %v96_v9 }
  0xe7   :  { %v200_v10 = vpop.eup %199 }
  0xe9   :  { %v202_v11 = vpop.eup %201 }
  0xea   :  { %v98_v12 = vadd.f32 %v202_v11, %v200_v10 }
  0xec   :  { %195 = vmatmul.mubr.msk.f32.vlgmr.msra.gmra.mrb[0].mxu1 %vm100_vm2, %v98_v12 }
 0x1bf   :  { %v170_v14 = vpop.f32.mrb[0].mxu1 }
 0x1c0   :  { %v175_v15 = vadd.f32 %v174_v13, %v170_v14  ;;  %v196_v16 = vpop.f32.mrb[1].mxu1 }
 0x1c2   :  { %177 = vst.msk [vmem:[%s248_s3] sm:$0xff] %vm18_vm1, %v175_v15 }

</bundles_post_ra>
